<compile_context>
chip_gen: v7x
topology: tpu7x:2x2x1
jax: 0.10.0
libtpu: 0.0.40
codegen_flags: <defaults>
</compile_context>

<pallas_src>
import jax
import jax.numpy as jnp
from jax.experimental import pallas as pl
from jax.experimental.pallas import tpu as pltpu


def _cluster_kernel(x_ref, w1_ref, b1_ref, w2_ref, b2_ref, w3_ref, b3_ref,
                    o_ref):
    """Fused 3-layer MLP: (Linear + LeakyReLU(0.2)) x2 -> Linear -> ReLU.

    Matmuls run on the native bf16 MXU path (bf16 inputs, f32 accumulation);
    bias-add / activation math stays in f32 (important on v5e: no bf16 VPU).
    """
    bf16 = jnp.bfloat16
    f32 = jnp.float32

    x = x_ref[...].astype(bf16)  # no-op if the producer already hands us bf16

    # Layer 1: Linear(latent -> layers[2]) + LeakyReLU(0.2)
    h = jnp.dot(x, w1_ref[...], preferred_element_type=f32) + b1_ref[...]
    h = jnp.maximum(h, 0.2 * h)  # == where(h>0, h, 0.2h) for slope < 1

    # Layer 2: Linear(layers[2] -> layers[1]) + LeakyReLU(0.2)
    h = jnp.dot(h.astype(bf16), w2_ref[...],
                preferred_element_type=f32) + b2_ref[...]
    h = jnp.maximum(h, 0.2 * h)

    # Layer 3: Linear(layers[1] -> layers[0]) + ReLU
    h = jnp.dot(h.astype(bf16), w3_ref[...],
                preferred_element_type=f32) + b3_ref[...]
    o_ref[...] = jnp.maximum(h, 0.0).astype(o_ref.dtype)


def _round_up(n, m):
    return ((n + m - 1) // m) * m


def _tensorcores_per_chip():
    """Best-effort TensorCore count per chip (v7x = 2, v5e/v6e = 1)."""
    try:
        info = pltpu.get_tpu_info()
        for attr in ("num_cores", "tensor_core_count", "num_tensorcores",
                     "cores_per_chip"):
            v = getattr(info, attr, None)
            if isinstance(v, int) and v > 0:
                return v
    except Exception:
        pass
    try:
        kind = jax.devices()[0].device_kind.lower()
        if "v7" in kind:
            return 2
    except Exception:
        pass
    return 1


def cluster_forward(x, params, *, batch_tile=4096, out_dtype=jnp.float32):
    """Run the Cluster decoder.

    x: [B, latent] (f32 or bf16). params: dict with w1..w3 (bf16, [in, out])
    and b1..b3 (f32, [1, out]).

    Tiling: only the batch axis is tiled; weights/biases (~44 KiB) stay
    VMEM-resident across grid steps via constant block indices. Tiles are
    balanced across grid steps (<= 7 rows of per-tile rounding waste) and the
    ragged boundary block is masked by Pallas -- no wrapper-side jnp.pad pass.
    The grid is only forced to >= num_tensorcores steps on multi-TC chips
    (v7x), where the "parallel" axis shards across cores.

    out_dtype: pass jnp.bfloat16 (and ideally a bf16 x) when the adjacent ops
    natively produce/consume bf16 -- the f32 writeback is otherwise the
    dominant HBM cost of this memory-bound kernel.
    """
    w1, b1, w2, b2, w3, b3 = (params["w1"], params["b1"], params["w2"],
                              params["b2"], params["w3"], params["b3"])
    B, latent = x.shape
    h2 = w1.shape[1]
    h1 = w2.shape[1]
    h0 = w3.shape[1]

    # --- tile / grid selection ------------------------------------------
    num_cores = _tensorcores_per_chip()
    n_steps = max(1, pl.cdiv(B, batch_tile))
    if num_cores > 1 and B >= 8 * num_cores:
        # Multi-TC chips: make sure both TensorCores get a "parallel" step.
        n_steps = max(n_steps, num_cores)
    tile = _round_up(pl.cdiv(B, n_steps), 8)
    if tile >= B:
        tile = B  # single block == full array dim; satisfies the (8,128) rule
    grid = (pl.cdiv(B, tile),)

    # Weights/biases are replicated (constant block index) -> stay resident
    # in VMEM across all grid steps, no per-step re-DMA.
    full = lambda shape: pl.BlockSpec(shape, lambda i: (0, 0))

    flops = 2 * B * (latent * h2 + h2 * h1 + h1 * h0)
    bytes_accessed = int(
        x.size * x.dtype.itemsize
        + B * h0 * jnp.dtype(out_dtype).itemsize
        + sum(int(p.size) * p.dtype.itemsize
              for p in (w1, b1, w2, b2, w3, b3)))
    cost = pl.CostEstimate(flops=int(flops), transcendentals=0,
                           bytes_accessed=bytes_accessed)

    out = pl.pallas_call(
        _cluster_kernel,
        out_shape=jax.ShapeDtypeStruct((B, h0), out_dtype),
        grid_spec=pl.GridSpec(
            grid=grid,
            in_specs=[
                pl.BlockSpec((tile, latent), lambda i: (i, 0)),  # x
                full((latent, h2)),  # w1
                full((1, h2)),       # b1
                full((h2, h1)),      # w2
                full((1, h1)),       # b2
                full((h1, h0)),      # w3
                full((1, h0)),       # b3
            ],
            out_specs=pl.BlockSpec((tile, h0), lambda i: (i, 0)),
        ),
        compiler_params=pltpu.CompilerParams(
            dimension_semantics=("parallel",)),
        cost_estimate=cost,
    )(x, w1, b1, w2, b2, w3, b3)

    return out


def init_params(key, latent_size, layers):
    """Deterministic parameter init (PyTorch-Linear-style uniform bounds).

    Weights stored as bf16 [in, out] (transpose of nn.Linear's [out, in]) for
    the native bf16 MXU path; biases stay f32 as [1, out]."""
    dims = [(latent_size, layers[2]), (layers[2], layers[1]),
            (layers[1], layers[0])]
    params = {}
    for idx, (fan_in, fan_out) in enumerate(dims, start=1):
        key, kw, kb = jax.random.split(key, 3)
        bound = 1.0 / (fan_in ** 0.5)
        params[f"w{idx}"] = jax.random.uniform(
            kw, (fan_in, fan_out), jnp.float32, -bound, bound
        ).astype(jnp.bfloat16)
        params[f"b{idx}"] = jax.random.uniform(
            kb, (1, fan_out), jnp.float32, -bound, bound)
    return params


def cluster_reference(x, params):
    """Pure-JAX reference mirroring the kernel's bf16-input / f32-accumulate
    matmul convention (for sanity checking)."""
    f32 = jnp.float32
    bf16 = jnp.bfloat16
    h = jnp.dot(x.astype(bf16), params["w1"],
                preferred_element_type=f32) + params["b1"]
    h = jnp.where(h > 0, h, 0.2 * h)
    h = jnp.dot(h.astype(bf16), params["w2"],
                preferred_element_type=f32) + params["b2"]
    h = jnp.where(h > 0, h, 0.2 * h)
    h = jnp.dot(h.astype(bf16), params["w3"],
                preferred_element_type=f32) + params["b3"]
    return jnp.maximum(h, 0.0)


if __name__ == "__main__":
    # cfg = {'use_batchnorm': False, 'latent_size': 32, 'layers': [128, 64, 32]}
    latent_size = 32
    layers = [128, 64, 32]   # net: 32 -> layers[2]=32 -> layers[1]=64 -> layers[0]=128
    batch = 48

    key = jax.random.PRNGKey(0)
    key, kx = jax.random.split(key)
    x = jax.random.normal(kx, (batch, latent_size), jnp.float32)
    params = init_params(key, latent_size, layers)

    # f32-I/O path (matches the PyTorch module's output dtype).
    out = cluster_forward(x, params)
    out = jax.block_until_ready(out)

    ref = cluster_reference(x, params)
    assert out.shape == (batch, layers[0])
    assert out.dtype == jnp.float32
    assert jnp.allclose(out, ref, atol=1e-4, rtol=1e-4)

    # bf16-I/O fast path (use only when adjacent ops natively speak bf16).
    out_bf16 = cluster_forward(x.astype(jnp.bfloat16), params,
                               out_dtype=jnp.bfloat16)
    out_bf16 = jax.block_until_ready(out_bf16)
    assert out_bf16.shape == (batch, layers[0])
    assert out_bf16.dtype == jnp.bfloat16
    assert jnp.allclose(out_bf16.astype(jnp.float32), ref,
                        atol=5e-2, rtol=5e-2)

    print("KERNEL_OK")
</pallas_src>

<mosaic_0001>
module attributes {stable_mosaic.version = 11 : i64} {
  func.func @_cluster_kernel(%arg0: i32, %arg1: memref<48x32xf32, #tpu.memory_space<vmem>>, %arg2: memref<32x32xbf16, #tpu.memory_space<vmem>>, %arg3: memref<1x32xf32, #tpu.memory_space<vmem>>, %arg4: memref<32x64xbf16, #tpu.memory_space<vmem>>, %arg5: memref<1x64xf32, #tpu.memory_space<vmem>>, %arg6: memref<64x128xbf16, #tpu.memory_space<vmem>>, %arg7: memref<1x128xf32, #tpu.memory_space<vmem>>, %arg8: memref<48x128xf32, #tpu.memory_space<vmem>>) attributes {dimension_semantics = [#tpu.dimension_semantics<parallel>], iteration_bounds = array<i64: 1>, scalar_prefetch = 0 : i64, scratch_operands = 0 : i64, tpu.core_type = #tpu.core_type<tc>, window_params = [{transform_indices = @transform_0, window_bounds = array<i64: 48, 32>}, {pipeline_mode = #tpu.pipeline_mode<synchronous>, transform_indices = @transform_1, window_bounds = array<i64: 32, 32>}, {pipeline_mode = #tpu.pipeline_mode<synchronous>, transform_indices = @transform_2, window_bounds = array<i64: 1, 32>}, {pipeline_mode = #tpu.pipeline_mode<synchronous>, transform_indices = @transform_3, window_bounds = array<i64: 32, 64>}, {pipeline_mode = #tpu.pipeline_mode<synchronous>, transform_indices = @transform_4, window_bounds = array<i64: 1, 64>}, {pipeline_mode = #tpu.pipeline_mode<synchronous>, transform_indices = @transform_5, window_bounds = array<i64: 64, 128>}, {pipeline_mode = #tpu.pipeline_mode<synchronous>, transform_indices = @transform_6, window_bounds = array<i64: 1, 128>}, {transform_indices = @transform_7, window_bounds = array<i64: 48, 128>}]} {
    %c0 = arith.constant 0 : index
    %c0_0 = arith.constant 0 : index
    %0 = vector.load %arg1[%c0, %c0_0] : memref<48x32xf32, #tpu.memory_space<vmem>>, vector<48x32xf32>
    %1 = arith.truncf %0 : vector<48x32xf32> to vector<48x32xbf16>
    %c0_1 = arith.constant 0 : index
    %c0_2 = arith.constant 0 : index
    %2 = vector.load %arg2[%c0_1, %c0_2] : memref<32x32xbf16, #tpu.memory_space<vmem>>, vector<32x32xbf16>
    %cst = arith.constant dense<0.000000e+00> : vector<48x32xf32>
    %3 = tpu.matmul %1, %2, %cst {dimension_numbers = #tpu.dot_dimension_numbers<[1], [0], [0], [1], [0, 0, 1, 1], [], []>} : vector<48x32xbf16>, vector<32x32xbf16>, vector<48x32xf32> -> vector<48x32xf32>
    %c0_3 = arith.constant 0 : index
    %c0_4 = arith.constant 0 : index
    %4 = vector.load %arg3[%c0_3, %c0_4] : memref<1x32xf32, #tpu.memory_space<vmem>>, vector<1x32xf32>
    %5 = vector.broadcast %4 : vector<1x32xf32> to vector<48x32xf32>
    %6 = arith.addf %3, %5 : vector<48x32xf32>
    %cst_5 = arith.constant 2.000000e-01 : f32
    %7 = vector.broadcast %cst_5 : f32 to vector<48x32xf32>
    %8 = arith.mulf %7, %6 : vector<48x32xf32>
    %9 = arith.maximumf %6, %8 : vector<48x32xf32>
    %10 = arith.truncf %9 : vector<48x32xf32> to vector<48x32xbf16>
    %c0_6 = arith.constant 0 : index
    %c0_7 = arith.constant 0 : index
    %11 = vector.load %arg4[%c0_6, %c0_7] : memref<32x64xbf16, #tpu.memory_space<vmem>>, vector<32x64xbf16>
    %cst_8 = arith.constant dense<0.000000e+00> : vector<48x64xf32>
    %12 = tpu.matmul %10, %11, %cst_8 {dimension_numbers = #tpu.dot_dimension_numbers<[1], [0], [0], [1], [0, 0, 1, 1], [], []>} : vector<48x32xbf16>, vector<32x64xbf16>, vector<48x64xf32> -> vector<48x64xf32>
    %c0_9 = arith.constant 0 : index
    %c0_10 = arith.constant 0 : index
    %13 = vector.load %arg5[%c0_9, %c0_10] : memref<1x64xf32, #tpu.memory_space<vmem>>, vector<1x64xf32>
    %14 = vector.broadcast %13 : vector<1x64xf32> to vector<48x64xf32>
    %15 = arith.addf %12, %14 : vector<48x64xf32>
    %cst_11 = arith.constant 2.000000e-01 : f32
    %16 = vector.broadcast %cst_11 : f32 to vector<48x64xf32>
    %17 = arith.mulf %16, %15 : vector<48x64xf32>
    %18 = arith.maximumf %15, %17 : vector<48x64xf32>
    %19 = arith.truncf %18 : vector<48x64xf32> to vector<48x64xbf16>
    %c0_12 = arith.constant 0 : index
    %c0_13 = arith.constant 0 : index
    %20 = vector.load %arg6[%c0_12, %c0_13] : memref<64x128xbf16, #tpu.memory_space<vmem>>, vector<64x128xbf16>
    %cst_14 = arith.constant dense<0.000000e+00> : vector<48x128xf32>
    %21 = tpu.matmul %19, %20, %cst_14 {dimension_numbers = #tpu.dot_dimension_numbers<[1], [0], [0], [1], [0, 0, 1, 1], [], []>} : vector<48x64xbf16>, vector<64x128xbf16>, vector<48x128xf32> -> vector<48x128xf32>
    %c0_15 = arith.constant 0 : index
    %c0_16 = arith.constant 0 : index
    %22 = vector.load %arg7[%c0_15, %c0_16] : memref<1x128xf32, #tpu.memory_space<vmem>>, vector<1x128xf32>
    %23 = vector.broadcast %22 : vector<1x128xf32> to vector<48x128xf32>
    %24 = arith.addf %21, %23 : vector<48x128xf32>
    %cst_17 = arith.constant 0.000000e+00 : f32
    %25 = vector.broadcast %cst_17 : f32 to vector<48x128xf32>
    %26 = arith.maximumf %24, %25 : vector<48x128xf32>
    %c0_18 = arith.constant 0 : index
    %c0_19 = arith.constant 0 : index
    %27 = vector.load %arg8[%c0_18, %c0_19] : memref<48x128xf32, #tpu.memory_space<vmem>>, vector<48x128xf32>
    tpu.vector_store %arg8[%c0_18, %c0_19], %26 {strides = array<i32>} : memref<48x128xf32, #tpu.memory_space<vmem>>, vector<48x128xf32>,
    return
  }
  func.func @transform_0(%arg0: i32) -> (i32, i32) {
    %c0_i32 = arith.constant 0 : i32
    %c0_i32_0 = arith.constant 0 : i32
    return %arg0, %c0_i32 : i32, i32
  }
  func.func @transform_1(%arg0: i32) -> (i32, i32) {
    %c0_i32 = arith.constant 0 : i32
    %c0_i32_0 = arith.constant 0 : i32
    %c0_i32_1 = arith.constant 0 : i32
    return %c0_i32, %c0_i32_0 : i32, i32
  }
  func.func @transform_2(%arg0: i32) -> (i32, i32) {
    %c0_i32 = arith.constant 0 : i32
    %c0_i32_0 = arith.constant 0 : i32
    %c0_i32_1 = arith.constant 0 : i32
    return %c0_i32, %c0_i32_0 : i32, i32
  }
  func.func @transform_3(%arg0: i32) -> (i32, i32) {
    %c0_i32 = arith.constant 0 : i32
    %c0_i32_0 = arith.constant 0 : i32
    %c0_i32_1 = arith.constant 0 : i32
    return %c0_i32, %c0_i32_0 : i32, i32
  }
  func.func @transform_4(%arg0: i32) -> (i32, i32) {
    %c0_i32 = arith.constant 0 : i32
    %c0_i32_0 = arith.constant 0 : i32
    %c0_i32_1 = arith.constant 0 : i32
    return %c0_i32, %c0_i32_0 : i32, i32
  }
  func.func @transform_5(%arg0: i32) -> (i32, i32) {
    %c0_i32 = arith.constant 0 : i32
    %c0_i32_0 = arith.constant 0 : i32
    %c0_i32_1 = arith.constant 0 : i32
    return %c0_i32, %c0_i32_0 : i32, i32
  }
  func.func @transform_6(%arg0: i32) -> (i32, i32) {
    %c0_i32 = arith.constant 0 : i32
    %c0_i32_0 = arith.constant 0 : i32
    %c0_i32_1 = arith.constant 0 : i32
    return %c0_i32, %c0_i32_0 : i32, i32
  }
  func.func @transform_7(%arg0: i32) -> (i32, i32) {
    %c0_i32 = arith.constant 0 : i32
    %c0_i32_0 = arith.constant 0 : i32
    return %arg0, %c0_i32 : i32, i32
  }
}

</mosaic_0001>

<bundles_post_ra>
// kernel: tpu_custom_call.1
= control target key start
LH: loop header
LB: loop body
LE: loop exit
PB: predicated region body
PF: predicated region fallthrough
CT: control target
= control target key end

     0   :  { %v510_v1 = vmov 0.0   ;;  %vm511_vm0 = vmmov 0   ;;  %vm60_vm1 = vcmask 261120   ;;  %s655_s0 = inlined_call_operand.vmem [shape: f32[48,32], index: 0, kind: input, shape index: {}]   ;;  %s656_s1 = inlined_call_operand.vmem [shape: bf16[32,32], index: 1, kind: input, shape index: {}]   ;;  %s657_s2 = inlined_call_operand.vmem [shape: f32[1,32], index: 2, kind: input, shape index: {}]   ;;  %s658_s3 = inlined_call_operand.vmem [shape: bf16[32,64], index: 3, kind: input, shape index: {}]   ;;  %s659_s4 = inlined_call_operand.vmem [shape: f32[1,64], index: 4, kind: input, shape index: {}]   ;;  %s660_s5 = inlined_call_operand.vmem [shape: bf16[64,128], index: 5, kind: input, shape index: {}]   ;;  %s661_s6 = inlined_call_operand.vmem [shape: f32[1,128], index: 6, kind: input, shape index: {}]   ;;  %s662_s7 = inlined_call_operand.hbm [shape: f32[48,128], index: 7, kind: output, shape index: {}]  }
   0x1   :  { %v478_v0 = vld [vmem:[%s656_s1] sm:$0xff]   ;;  %417 = vmatprep.subr.bf16.mxu0 %v510_v1  ;;  %469 = vmatprep.subr.bf16.mxu1 %v510_v1  ;;  %v479_v2 = vld [vmem:[%s656_s1 + $0x8] sm:$0xff]  }
   0x2   :  { %418 = vmatpush3.bf16.msra.mxu0 %v478_v0  ;;  %421 = vmatprep.mubr.msk.bf16.mxu0 %vm511_vm0, %v510_v1  ;;  %v28_v3 = vld [vmem:[%s655_s0] sm:$0xff]  ;;  %v29_v4 = vld [vmem:[%s655_s0 + $0x8] sm:$0xff] }
   0x3   :  { %419 = vmatprep.subr.bf16.mxu0 %v510_v1  ;;  %471 = vmatpush3.bf16.msra.mxu1 %v478_v0  ;;  %v32_v5 = vld [vmem:[%s655_s0 + $0x20] sm:$0xff]  ;;  %v33_v6 = vld [vmem:[%s655_s0 + $0x28] sm:$0xff]  ;;  %v34_v7 = vpack.c.bf16 %v29_v4, %v28_v3 }
   0x4   :  { %470 = vmatprep.subr.bf16.mxu1 %v510_v1  ;;  %429 = vmatprep.mubr.msk.bf16.mxu1 %vm511_vm0, %v510_v1  ;;  %v36_v8 = vpack.c.bf16 %v33_v6, %v32_v5 }
   0x6   :  { %420 = vmatpush3.bf16.msra.mxu0 %v479_v2 }
   0x7   :  { %472 = vmatpush3.bf16.msra.mxu1 %v479_v2  ;;  %449 = vmatprep.subr.bf16.mxu0 %v510_v1 }
   0x8   :  { %433 = vmatprep.subr.bf16.mxu1 %v510_v1 }
   0x9   :  { %12 = vsyncpa [#allocation3], 0  ;;  %422 = vmatmul.mubr.msk.bf16.vlgmr.msra.gmra.mrb[0].mxu0 %vm60_vm1, %v34_v7  ;;  %v30_v9 = vld [vmem:[%s655_s0 + $0x10] sm:$0xff]  ;;  %v31_v10 = vld [vmem:[%s655_s0 + $0x18] sm:$0xff]  ;;  %vm285_vm2 = vcmask 523264  }
   0xa   :  { %425 = vmatprep.mubr.msk.bf16.mxu0 %vm511_vm0, %v510_v1  ;;  %430 = vmatmul.mubr.msk.bf16.vlgmr.msra.gmra.mrb[0].mxu1 %vm60_vm1, %v36_v8  ;;  %v35_v11 = vpack.c.bf16 %v31_v10, %v30_v9  ;;  %v480_v12 = vld [vmem:[%s658_s3] sm:$0xff]   ;;  %v481_v13 = vld [vmem:[%s658_s3 + $0x8] sm:$0xff]   ;;  %v484_v50 = vld [vmem:[%s660_s5 + $0x10] sm:$0xff]  }
   0xb   :  { %437 = vmatprep.mubr.msk.bf16.mxu1 %vm511_vm0, %v510_v1  ;;  %434 = vmatpush3.bf16.msra.mxu1 %v480_v12  ;;  %v482_v14 = vld [vmem:[%s660_s5] sm:$0xff]   ;;  %v483_v15 = vld [vmem:[%s660_s5 + $0x8] sm:$0xff]   ;;  %v485_v51 = vld [vmem:[%s660_s5 + $0x18] sm:$0xff]  }
   0xc   :  { %435 = vmatprep.subr.bf16.mxu1 %v510_v1  ;;  %450 = vmatpush3.bf16.msra.mxu0 %v482_v14  ;;  %v380_v16 = vld [vmem:[%s657_s2] ss:$0 sm:$0xff] }
   0xd   :  { %451 = vmatprep.subr.bf16.mxu0 %v510_v1  ;;  %v386_v52 = vld [vmem:[%s659_s4] ss:$0 sm:$0xff] }
   0xf   :  { %436 = vmatpush3.bf16.msra.mxu1 %v481_v13 }
  0x10   :  { %452 = vmatpush3.bf16.msra.mxu0 %v483_v15 }
  0x11   :  { %426 = vmatmul.mubr.msk.bf16.gmra.mrb[4].mxu0 %vm60_vm1, %v35_v11  ;;  %453 = vmatprep.subr.bf16.mxu0 %v510_v1 }
  0x12   :  { %457 = vmatprep.mubr.msk.bf16.mxu0 %vm511_vm0, %v510_v1 }
  0x14   :  { %454 = vmatpush3.bf16.msra.mxu0 %v484_v50 }
  0x15   :  { %455 = vmatprep.subr.bf16.mxu0 %v510_v1 }
  0x18   :  { %456 = vmatpush3.bf16.msra.mxu0 %v485_v51 }
  0xdc   :  { %v104_v17 = vpop.f32.mrb[0].mxu0 }
  0xdd   :  { %v105_v18 = vadd.f32 %v380_v16, %v104_v17  ;;  %v423_v19 = vpop.f32.mrb[1].mxu0  ;;  %v120_v20 = vpop.f32.mrb[0].mxu1 }
  0xde   :  { %v107_v21 = vpop.f32.mrb[2].mxu0  ;;  %v121_v22 = vadd.f32 %v380_v16, %v120_v20  ;;  %v431_v23 = vpop.f32.mrb[1].mxu1 }
  0xdf   :  { %v127_v24 = vmul.f32 0.2, %v105_v18  ;;  %v108_v25 = vadd.f32 %v380_v16, %v107_v21  ;;  %v424_v26 = vpop.f32.mrb[3].mxu0  ;;  %v123_v27 = vpop.f32.mrb[2].mxu1  ;;  %v392_v23 = vld [vmem:[%s661_s6] ss:$0 sm:$0xff] }
  0xe0   :  { %v131_v28 = vmul.f32 0.2, %v121_v22  ;;  %v124_v29 = vadd.f32 %v380_v16, %v123_v27  ;;  %v432_v30 = vpop.f32.mrb[3].mxu1  ;;  %s512_s6 = smov [#allocation2]  }
  0xe1   :  { %v128_v31 = vmul.f32 0.2, %v108_v25  ;;  %v133_v34 = vmax.f32 %v105_v18, %v127_v24  ;;  %s369_s29 = sshll.u32 %s512_s6, 4  ;;  %s370_s29 = int_to_ptr.vmem [resolvable:$true] %s369_s29 }
  0xe2   :  { %v137_v32 = vmax.f32 %v121_v22, %v131_v28  ;;  %v132_v33 = vmul.f32 0.2, %v124_v29  ;;  %s486_s30 = scalar_lea.vmem %s370_s29, 768  ;;  %p491_p1 = scmp.lt.s32.totalorder %s370_s29, %s370_s29 }
  0xe3   :  { %v134_v35 = vmax.f32 %v108_v25, %v128_v31  ;;  %p487_p0 = scmp.ne.s32.totalorder %s370_s29, %s486_s30  ;;  %p492_p2 = scmp.lt.s32.totalorder %s486_s30, %s486_s30 }
  0xe4   :  { %v112_v36 = vpop.f32.mrb[4].mxu0  ;;  %v138_v37 = vmax.f32 %v124_v29, %v132_v33 }
  0xe5   :  { %v139_v38 = vpack.c.bf16 %v134_v35, %v133_v34  ;;  %v113_v39 = vadd.f32 %v380_v16, %v112_v36  ;;  %v427_v40 = vpop.f32.mrb[5].mxu0  ;;  %p493_p3 = por %p492_p2, %p491_p1 }
  0xe6   :  { %v115_v41 = vpop.f32.mrb[6].mxu0  ;;  %v141_v42 = vpack.c.bf16 %v138_v37, %v137_v32 }
  0xe7   :  { %v129_v43 = vmul.f32 0.2, %v113_v39  ;;  %v116_v44 = vadd.f32 %v380_v16, %v115_v41  ;;  %v428_v45 = vpop.f32.mrb[7].mxu0  ;;  %438 = vmatmul.mubr.msk.bf16.vlgmr.msra.gmra.mrb[4].mxu1 %vm60_vm1, %v139_v38  ;;  %p494_p4 = pnand %p493_p3, %p487_p0 }
  0xe8   :  { %441 = vmatprep.mubr.msk.bf16.mxu1 %vm511_vm0, %v510_v1 }
  0xe9   :  { %v130_v46 = vmul.f32 0.2, %v116_v44  ;;  %v135_v47 = vmax.f32 %v113_v39, %v129_v43 }
  0xeb   :  { %v136_v48 = vmax.f32 %v116_v44, %v130_v46 }
  0xed   :  { %v140_v49 = vpack.c.bf16 %v136_v48, %v135_v47 }
  0xef   :  { %442 = vmatmul.mubr.msk.bf16.gmra.mrb[8].mxu1 %vm60_vm1, %v140_v49 }
  0xf0   :  { %445 = vmatprep.mubr.msk.bf16.mxu1 %vm511_vm0, %v510_v1 }
  0xf7   :  { %446 = vmatmul.mubr.msk.bf16.gmra.mrb[12].mxu1 %vm60_vm1, %v141_v42 }
 0x1ba   :  { %v208_v53 = vpop.f32.mrb[4].mxu1 }
 0x1bb   :  { %v209_v54 = vadd.f32 %v386_v52, %v208_v53  ;;  %v439_v55 = vpop.f32.mrb[5].mxu1 }
 0x1bc   :  { %v211_v56 = vpop.f32.mrb[6].mxu1 }
 0x1bd   :  { %v231_v57 = vmul.f32 0.2, %v209_v54  ;;  %v212_v58 = vadd.f32 %v386_v52, %v211_v56  ;;  %v440_v59 = vpop.f32.mrb[7].mxu1 }
 0x1bf   :  { %v232_v60 = vmul.f32 0.2, %v212_v58  ;;  %v237_v61 = vmax.f32 %v209_v54, %v231_v57 }
 0x1c1   :  { %v238_v62 = vmax.f32 %v212_v58, %v232_v60 }
 0x1c2   :  { %v216_v63 = vpop.f32.mrb[8].mxu1 }
 0x1c3   :  { %v243_v0 = vpack.c.bf16 %v238_v62, %v237_v61  ;;  %v217_v2 = vadd.f32 %v386_v52, %v216_v63  ;;  %v443_v3 = vpop.f32.mrb[9].mxu1 }
 0x1c4   :  { %v219_v4 = vpop.f32.mrb[10].mxu1 }
 0x1c5   :  { %v233_v5 = vmul.f32 0.2, %v217_v2  ;;  %v220_v6 = vadd.f32 %v386_v52, %v219_v4  ;;  %v444_v7 = vpop.f32.mrb[11].mxu1  ;;  %458 = vmatmul.mubr.msk.bf16.vlgmr.msra.gmra.mrb[8].mxu0 %vm285_vm2, %v243_v0 }
 0x1c6   :  { %461 = vmatprep.mubr.msk.bf16.mxu0 %vm511_vm0, %v510_v1 }
 0x1c7   :  { %v234_v8 = vmul.f32 0.2, %v220_v6  ;;  %v239_v9 = vmax.f32 %v217_v2, %v233_v5 }
 0x1c9   :  { %v240_v10 = vmax.f32 %v220_v6, %v234_v8 }
 0x1ca   :  { %v224_v11 = vpop.f32.mrb[12].mxu1 }
 0x1cb   :  { %v244_v12 = vpack.c.bf16 %v240_v10, %v239_v9  ;;  %v225_v13 = vadd.f32 %v386_v52, %v224_v11  ;;  %v447_v14 = vpop.f32.mrb[13].mxu1 }
 0x1cc   :  { %v227_v15 = vpop.f32.mrb[14].mxu1 }
 0x1cd   :  { %v235_v16 = vmul.f32 0.2, %v225_v13  ;;  %v228_v17 = vadd.f32 %v386_v52, %v227_v15  ;;  %v448_v18 = vpop.f32.mrb[15].mxu1  ;;  %462 = vmatmul.mubr.msk.bf16.gmra.mrb[12].mxu0 %vm285_vm2, %v244_v12 }
 0x1ce   :  { %465 = vmatprep.mubr.msk.bf16.mxu0 %vm511_vm0, %v510_v1 }
 0x1cf   :  { %v236_v19 = vmul.f32 0.2, %v228_v17  ;;  %v241_v20 = vmax.f32 %v225_v13, %v235_v16 }
 0x1d1   :  { %v242_v21 = vmax.f32 %v228_v17, %v236_v19 }
 0x1d3   :  { %v245_v22 = vpack.c.bf16 %v242_v21, %v241_v20 }
 0x1d5   :  { %466 = vmatmul.mubr.msk.bf16.gmra.mrb[16].mxu0 %vm285_vm2, %v245_v22 }
 0x298   :  { %v329_v24 = vpop.f32.mrb[8].mxu0 }
 0x299   :  { %v330_v25 = vadd.f32 %v392_v23, %v329_v24  ;;  %v459_v26 = vpop.f32.mrb[9].mxu0 }
 0x29a   :  { %v332_v27 = vpop.f32.mrb[10].mxu0 }
 0x29b   :  { %v352_v28 = vmax.f32 %v330_v25, 0.0  ;;  %v333_v29 = vadd.f32 %v392_v23, %v332_v27  ;;  %v460_v30 = vpop.f32.mrb[11].mxu0 }
 0x29d   :  { %358 = vst [vmem:[#allocation2] sm:$0xff] %v352_v28  ;;  %v353_v31 = vmax.f32 %v333_v29, 0.0 }
 0x29f   :  { %359 = vst [vmem:[#allocation2 + $0x8] sm:$0xff] %v353_v31 }
 0x2a0   :  { %v337_v1 = vpop.f32.mrb[12].mxu0 }
 0x2a1   :  { %v338_v32 = vadd.f32 %v392_v23, %v337_v1  ;;  %v463_v33 = vpop.f32.mrb[13].mxu0 }
 0x2a2   :  { %v340_v34 = vpop.f32.mrb[14].mxu0 }
 0x2a3   :  { %v354_v35 = vmax.f32 %v338_v32, 0.0  ;;  %v341_v36 = vadd.f32 %v392_v23, %v340_v34  ;;  %v464_v37 = vpop.f32.mrb[15].mxu0 }
 0x2a5   :  { %360 = vst [vmem:[#allocation2 + $0x10] sm:$0xff] %v354_v35  ;;  %v355_v38 = vmax.f32 %v341_v36, 0.0 }
 0x2a7   :  { %361 = vst [vmem:[#allocation2 + $0x18] sm:$0xff] %v355_v38 }
 0x2a8   :  { %v345_v39 = vpop.f32.mrb[16].mxu0 }
 0x2a9   :  { %v346_v40 = vadd.f32 %v392_v23, %v345_v39  ;;  %v467_v41 = vpop.f32.mrb[17].mxu0 }
 0x2aa   :  { %v348_v42 = vpop.f32.mrb[18].mxu0 }
 0x2ab   :  { %v356_v43 = vmax.f32 %v346_v40, 0.0  ;;  %v349_v44 = vadd.f32 %v392_v23, %v348_v42  ;;  %v468_v45 = vpop.f32.mrb[19].mxu0 }
 0x2ad   :  { %362 = vst [vmem:[#allocation2 + $0x20] sm:$0xff] %v356_v43  ;;  %v357_v46 = vmax.f32 %v349_v44, 0.0 }
 0x2af   :  { %363 = vst [vmem:[#allocation2 + $0x28] sm:$0xff] %v357_v46 }
 0x2b0   :  { %497 = shalt.err (!%p494_p4)
}
 0x2b1   :  { %s498_s10 = scalar_lea.hbm %s662_s7, 768 }
 0x2b2   :  { %p499_p5 = scmp.ne.s32.totalorder %s662_s7, %s498_s10  ;;  %p502_p6 = scmp.lt.u32.totalorder %s498_s10, %s662_s7 }
 0x2b4   :  { %p504_p7 = pnand %p502_p6, %p499_p5 }
 0x2b6   :  { %507 = shalt.err (!%p504_p7)
}
 0x2b7   :  { %s513_s14 = smov 128   ;;  %s514_s15 = smov 8  }
 0x2b8   :  { %375 = dma.vmem_to_hbm [thread:$0]  %s370_s29, 768, %s662_s7, [#allocation3], %s513_s14, %s513_s14, %s514_s15  }
 0x2b9   :  { %508 = dma.done.wait [#allocation3], 768  }
 0x2ba   :  { %509 = vsyncadd [#allocation3], 4294966528 }
 0x2bb   :  { %379 = vsyncpa [#allocation3], 1 }

</bundles_post_ra>
